<compile_context>
chip_gen: v7x
topology: tpu7x:2x2x1
jax: 0.10.0
libtpu: 0.0.40
codegen_flags: <defaults>
</compile_context>

<pallas_src>
import functools

import jax
import jax.numpy as jnp
from jax import lax
from jax.experimental import pallas as pl
from jax.experimental.pallas import tpu as pltpu


def _round_up(x, m):
    return ((x + m - 1) // m) * m


def _sdpa_kernel(q_ref, k_ref, v_ref, o_ref, m_sc, l_sc, acc_sc, *,
                 inv_scale, sl_total, seq_tile, n_in, n_out_pad, mask_seq):
    s_idx = pl.program_id(1)        # seq axis: innermost, "arbitrary" (softmax reduction)

    @pl.when(s_idx == 0)
    def _init():
        m_sc[...] = jnp.full_like(m_sc, -jnp.inf)
        l_sc[...] = jnp.zeros_like(l_sc)
        acc_sc[...] = jnp.zeros_like(acc_sc)     # padded lanes stay 0 forever

    q = q_ref[...]                  # (1 or ts, tb, n_in), input dtype
    k = k_ref[...]                  # (ts, tb, n_in)
    v = v_ref[...]                  # (ts, tb, n_in)

    # dot[s, b] = sum_d q*k / sqrt(n_in).  Multiply in the input dtype (bf16
    # stays on the bf16 VPU), accumulate in f32.  keepdims keeps batch on
    # sublanes with a size-1 (lane-replicated) minor dim, so every broadcast
    # below runs along lanes -- no XLU transposes in the inner loop.
    dot = jnp.sum((q * k).astype(jnp.float32), axis=-1, keepdims=True) * inv_scale

    if mask_seq:
        # cdiv grid: the last seq tile is clipped; rows past sl_total hold
        # garbage VMEM.  Mask them out of the softmax (and of e*v below).
        gs = s_idx * seq_tile + lax.broadcasted_iota(jnp.int32, dot.shape, 0)
        valid = gs < sl_total
        dot = jnp.where(valid, dot, -jnp.inf)

    # ---- online softmax over the seq axis (flash-style accumulators) ----
    m_prev = m_sc[...]                                        # (1, tb, 1)
    m_new = jnp.maximum(m_prev, jnp.max(dot, axis=0, keepdims=True))
    alpha = jnp.exp(m_prev - m_new)                           # (1, tb, 1)
    e = jnp.exp(dot - m_new)                                  # (ts, tb, 1)
    l_sc[...] = alpha * l_sc[...] + jnp.sum(e, axis=0, keepdims=True)

    # weights * values: product in the input dtype, f32 accumulation; the
    # broadcast of e over n_in is a cheap lane-broadcast (batch on sublanes).
    ev = (e.astype(v.dtype) * v).astype(jnp.float32)          # (ts, tb, n_in)
    if mask_seq:
        ev = jnp.where(valid, ev, 0.0)      # kill inf/NaN garbage in clipped rows
    pv = jnp.sum(ev, axis=0, keepdims=True)                   # (1, tb, n_in)

    if n_out_pad == n_in:
        acc_sc[...] = alpha * acc_sc[...] + pv
    else:
        acc_sc[:, :, :n_in] = alpha * acc_sc[:, :, :n_in] + pv
    m_sc[...] = m_new

    @pl.when(s_idx == pl.num_programs(1) - 1)
    def _finalize():
        inv_l = pl.reciprocal(l_sc[...], approx=True)         # EUP slot, ~free
        out = acc_sc[...] * inv_l                             # padded lanes stay 0
        o_ref[...] = out[0].astype(o_ref.dtype)               # (tb, n_out_pad) dense vst


def sdp_attention(query, keys, values, *, seq_tile=None):
    """query: (sl, bs, n_in), (1, bs, n_in) or (bs, n_in); keys/values: (sl, bs, n_in)."""
    sl, bs, n_in = keys.shape
    if values.shape != keys.shape:
        raise ValueError("keys/values shape mismatch")
    if query.ndim == 2:
        query = query[None]                  # (1, bs, n_in): no materialized broadcast
    q_sl = query.shape[0]
    if q_sl not in (1, sl) or query.shape[1:] != (bs, n_in):
        raise ValueError("query must broadcast against keys (sl, bs, n_in)")

    in_dtype = keys.dtype
    itemsize = jnp.dtype(in_dtype).itemsize
    out_itemsize = jnp.dtype(values.dtype).itemsize
    inv_scale = 1.0 / (float(n_in) ** 0.5)

    # Sublane packing granule: 8 rows for 32-bit, 16 for bf16, 32 for int8/fp8.
    sub = max(8, 32 // max(1, itemsize))

    # Batch tile: full batch when it fits one packed granule, otherwise one
    # granule per tile -> >=2 tiles on the "parallel" axis whenever bs > sub.
    tb = bs if bs <= sub else sub

    # ---- generation-aware VMEM budgeting ----
    try:
        vmem_cap = int(pltpu.get_tpu_info().vmem_capacity_bytes)
    except Exception:
        vmem_cap = 64 * 1024 * 1024                 # conservative (v7x-sized)
    if vmem_cap >= 96 * 1024 * 1024:                # v5e / v6e: 128 MiB physical
        tile_budget = 6 * 1024 * 1024               # per input tile
        vmem_ceiling = 96 * 1024 * 1024
    else:                                           # v7x: 64 MiB physical
        tile_budget = 2 * 1024 * 1024
        vmem_ceiling = 48 * 1024 * 1024

    row_bytes = tb * n_in * itemsize
    ts_cap = max(1, tile_budget // max(1, row_bytes))
    if seq_tile is not None:
        ts = max(1, min(int(seq_tile), sl, ts_cap))  # clamp user tile to budget
    elif ts_cap >= sl:
        ts = sl                                      # single seq tile, no masking
    else:
        ts = max(1, min(ts_cap, sl))
        if ts >= sub:
            ts = (ts // sub) * sub
        if sl % ts != 0:
            # Prefer a nearby divisor of sl (skips the in-kernel edge masking).
            for cand in range(ts, max(ts // 2, 1) - 1, -1):
                if sl % cand == 0:
                    ts = cand
                    break
    mask_seq = (sl % ts) != 0
    n_out_pad = _round_up(n_in, 128)                 # lane-dense output store

    grid = (pl.cdiv(bs, tb), pl.cdiv(sl, ts))        # (batch tiles, seq tiles)

    kv_spec = pl.BlockSpec((ts, tb, n_in), lambda b, s: (s, b, 0))
    if q_sl == sl:
        q_spec = kv_spec
        q_rows = ts
    else:
        q_spec = pl.BlockSpec((1, tb, n_in), lambda b, s: (0, b, 0))
        q_rows = 1
    out_spec = pl.BlockSpec((tb, n_out_pad), lambda b, s: (b, 0))

    # Derive vmem_limit_bytes from the actual footprint (double-buffered
    # inputs + output block + scratch) instead of a hard-coded constant.
    vmem_needed = (2 * (2 * ts + q_rows) * row_bytes
                   + 2 * tb * n_out_pad * out_itemsize
                   + (2 * tb + tb * n_out_pad) * 4)
    vmem_limit = int(min(vmem_ceiling, max(32 * 1024 * 1024, 2 * vmem_needed)))

    kernel = functools.partial(
        _sdpa_kernel, inv_scale=inv_scale, sl_total=sl, seq_tile=ts,
        n_in=n_in, n_out_pad=n_out_pad, mask_seq=mask_seq)

    cost = pl.CostEstimate(
        flops=int(4 * sl * bs * n_in),
        transcendentals=int(sl * bs + bs),
        bytes_accessed=int((query.size + keys.size + values.size) * itemsize
                           + bs * n_in * out_itemsize),
    )

    out_padded = pl.pallas_call(
        kernel,
        out_shape=jax.ShapeDtypeStruct((bs, n_out_pad), values.dtype),
        grid_spec=pltpu.PrefetchScalarGridSpec(
            num_scalar_prefetch=0,
            grid=grid,
            in_specs=[q_spec, kv_spec, kv_spec],
            out_specs=out_spec,
            scratch_shapes=[
                pltpu.VMEM((1, tb, 1), jnp.float32),           # running max m
                pltpu.VMEM((1, tb, 1), jnp.float32),           # running sum l
                pltpu.VMEM((1, tb, n_out_pad), jnp.float32),   # running acc sum(e*v)
            ]),
        compiler_params=pltpu.CompilerParams(
            dimension_semantics=("parallel", "arbitrary"),
            vmem_limit_bytes=vmem_limit),
        cost_estimate=cost,
    )(query, keys, values)

    if n_out_pad != n_in:
        out_padded = out_padded[:, :n_in]          # tiny (bs, n_in) slice copy
    return out_padded


def _reference(q, k, v, n_in):
    q = q.astype(jnp.float32)
    k = k.astype(jnp.float32)
    v = v.astype(jnp.float32)
    dot = jnp.sum(q * k, axis=-1) / jnp.sqrt(jnp.float32(n_in))
    w = jax.nn.softmax(dot, axis=0)[..., None]
    return jnp.sum(w * v, axis=0)


if __name__ == "__main__":
    # 1) full-shape query (matches the PyTorch usage with same-shape q/k/v)
    sl, bs, n_in = 8, 2, 32
    kq, kk, kv = jax.random.split(jax.random.PRNGKey(0), 3)
    q = jax.random.normal(kq, (sl, bs, n_in), dtype=jnp.float32)
    k = jax.random.normal(kk, (sl, bs, n_in), dtype=jnp.float32)
    v = jax.random.normal(kv, (sl, bs, n_in), dtype=jnp.float32)
    out = jax.block_until_ready(sdp_attention(q, k, v))
    ref = _reference(q, k, v, n_in)
    assert out.shape == (bs, n_in)
    assert jnp.allclose(out, ref, atol=5e-3, rtol=5e-3), "mismatch (full q)"

    # 2) broadcastable (bs, n_in) query -- handled without materializing bcast
    q2 = q[0]
    out2 = jax.block_until_ready(sdp_attention(q2, k, v))
    ref2 = _reference(q2[None], k, v, n_in)
    assert jnp.allclose(out2, ref2, atol=5e-3, rtol=5e-3), "mismatch (bcast q)"

    # 3) seq-tiled run: multiple seq tiles + clipped/masked edge tile (no pad copies)
    sl3 = 20
    kq3, kk3, kv3 = jax.random.split(jax.random.PRNGKey(1), 3)
    q3 = jax.random.normal(kq3, (sl3, bs, n_in), dtype=jnp.float32)
    k3 = jax.random.normal(kk3, (sl3, bs, n_in), dtype=jnp.float32)
    v3 = jax.random.normal(kv3, (sl3, bs, n_in), dtype=jnp.float32)
    out3 = jax.block_until_ready(sdp_attention(q3, k3, v3, seq_tile=8))
    ref3 = _reference(q3, k3, v3, n_in)
    assert jnp.allclose(out3, ref3, atol=5e-3, rtol=5e-3), "mismatch (seq-tiled)"

    # 4) batch remainder: 2 batch tiles on the parallel axis, clipped last tile
    sl4, bs4 = 16, 12
    kq4, kk4, kv4 = jax.random.split(jax.random.PRNGKey(2), 3)
    q4 = jax.random.normal(kq4, (sl4, bs4, n_in), dtype=jnp.float32)
    k4 = jax.random.normal(kk4, (sl4, bs4, n_in), dtype=jnp.float32)
    v4 = jax.random.normal(kv4, (sl4, bs4, n_in), dtype=jnp.float32)
    out4 = jax.block_until_ready(sdp_attention(q4, k4, v4))
    ref4 = _reference(q4, k4, v4, n_in)
    assert out4.shape == (bs4, n_in)
    assert jnp.allclose(out4, ref4, atol=5e-3, rtol=5e-3), "mismatch (batch-tiled)"

    # 5) bf16, lane/sublane-aligned shapes (dtype-aware batch tile, bf16 products)
    sl5, bs5, d5 = 16, 16, 128
    kq5, kk5, kv5 = jax.random.split(jax.random.PRNGKey(3), 3)
    q5 = jax.random.normal(kq5, (sl5, bs5, d5), dtype=jnp.bfloat16)
    k5 = jax.random.normal(kk5, (sl5, bs5, d5), dtype=jnp.bfloat16)
    v5 = jax.random.normal(kv5, (sl5, bs5, d5), dtype=jnp.bfloat16)
    out5 = jax.block_until_ready(sdp_attention(q5, k5, v5))
    ref5 = _reference(q5, k5, v5, d5)
    assert jnp.allclose(out5.astype(jnp.float32), ref5, atol=5e-2, rtol=5e-2), \
        "mismatch (bf16)"

    print("KERNEL_OK")
</pallas_src>

<mosaic_0001>
module attributes {stable_mosaic.version = 11 : i64} {
  func.func @_sdpa_kernel(%arg0: i32, %arg1: i32, %arg2: memref<8x2x32xf32, #tpu.memory_space<vmem>>, %arg3: memref<8x2x32xf32, #tpu.memory_space<vmem>>, %arg4: memref<8x2x32xf32, #tpu.memory_space<vmem>>, %arg5: memref<2x128xf32, #tpu.memory_space<vmem>>, %arg6: memref<1x2x1xf32, #tpu.memory_space<vmem>>, %arg7: memref<1x2x1xf32, #tpu.memory_space<vmem>>, %arg8: memref<1x2x128xf32, #tpu.memory_space<vmem>>) attributes {dimension_semantics = [#tpu.dimension_semantics<parallel>, #tpu.dimension_semantics<arbitrary>], iteration_bounds = array<i64: 1, 1>, scalar_prefetch = 0 : i64, scratch_operands = 3 : i64, tpu.core_type = #tpu.core_type<tc>, window_params = [{transform_indices = @transform_0, window_bounds = array<i64: 8, 2, 32>}, {transform_indices = @transform_1, window_bounds = array<i64: 8, 2, 32>}, {transform_indices = @transform_2, window_bounds = array<i64: 8, 2, 32>}, {transform_indices = @transform_3, window_bounds = array<i64: 2, 128>}]} {
    %c0_i32 = arith.constant 0 : i32
    %0 = arith.cmpi eq, %arg1, %c0_i32 : i32
    %1 = arith.extui %0 : i1 to i32
    %c0_i32_0 = arith.constant 0 : i32
    %2 = arith.cmpi ne, %1, %c0_i32_0 : i32
    scf.if %2 {
      %cst_33 = arith.constant 0xFF800000 : f32
      %39 = vector.broadcast %cst_33 : f32 to vector<1x2x1xf32>
      %c0_34 = arith.constant 0 : index
      %c0_35 = arith.constant 0 : index
      %c0_36 = arith.constant 0 : index
      %40 = vector.load %arg6[%c0_34, %c0_35, %c0_36] : memref<1x2x1xf32, #tpu.memory_space<vmem>>, vector<1x2x1xf32>
      tpu.vector_store %arg6[%c0_34, %c0_35, %c0_36], %39 {strides = array<i32>} : memref<1x2x1xf32, #tpu.memory_space<vmem>>, vector<1x2x1xf32>,
      %cst_37 = arith.constant 0.000000e+00 : f32
      %41 = vector.broadcast %cst_37 : f32 to vector<1x2x1xf32>
      %c0_38 = arith.constant 0 : index
      %c0_39 = arith.constant 0 : index
      %c0_40 = arith.constant 0 : index
      %42 = vector.load %arg7[%c0_38, %c0_39, %c0_40] : memref<1x2x1xf32, #tpu.memory_space<vmem>>, vector<1x2x1xf32>
      tpu.vector_store %arg7[%c0_38, %c0_39, %c0_40], %41 {strides = array<i32>} : memref<1x2x1xf32, #tpu.memory_space<vmem>>, vector<1x2x1xf32>,
      %cst_41 = arith.constant 0.000000e+00 : f32
      %43 = vector.broadcast %cst_41 : f32 to vector<1x2x128xf32>
      %c0_42 = arith.constant 0 : index
      %c0_43 = arith.constant 0 : index
      %c0_44 = arith.constant 0 : index
      %44 = vector.load %arg8[%c0_42, %c0_43, %c0_44] : memref<1x2x128xf32, #tpu.memory_space<vmem>>, vector<1x2x128xf32>
      tpu.vector_store %arg8[%c0_42, %c0_43, %c0_44], %43 {strides = array<i32>} : memref<1x2x128xf32, #tpu.memory_space<vmem>>, vector<1x2x128xf32>,
    } else {
    }
    %c0 = arith.constant 0 : index
    %c0_1 = arith.constant 0 : index
    %c0_2 = arith.constant 0 : index
    %3 = vector.load %arg2[%c0, %c0_1, %c0_2] : memref<8x2x32xf32, #tpu.memory_space<vmem>>, vector<8x2x32xf32>
    %c0_3 = arith.constant 0 : index
    %c0_4 = arith.constant 0 : index
    %c0_5 = arith.constant 0 : index
    %4 = vector.load %arg3[%c0_3, %c0_4, %c0_5] : memref<8x2x32xf32, #tpu.memory_space<vmem>>, vector<8x2x32xf32>
    %c0_6 = arith.constant 0 : index
    %c0_7 = arith.constant 0 : index
    %c0_8 = arith.constant 0 : index
    %5 = vector.load %arg4[%c0_6, %c0_7, %c0_8] : memref<8x2x32xf32, #tpu.memory_space<vmem>>, vector<8x2x32xf32>
    %6 = arith.mulf %3, %4 : vector<8x2x32xf32>
    %cst = arith.constant dense<0.000000e+00> : vector<8x2xf32>
    %7 = vector.multi_reduction <add>, %6, %cst [2] : vector<8x2x32xf32> to vector<8x2xf32>
    %8 = vector.shape_cast %7 : vector<8x2xf32> to vector<8x2x1xf32>
    %cst_9 = arith.constant 0.176776692 : f32
    %9 = vector.broadcast %cst_9 : f32 to vector<8x2x1xf32>
    %10 = arith.mulf %8, %9 : vector<8x2x1xf32>
    %c0_10 = arith.constant 0 : index
    %c0_11 = arith.constant 0 : index
    %c0_12 = arith.constant 0 : index
    %11 = vector.load %arg6[%c0_10, %c0_11, %c0_12] : memref<1x2x1xf32, #tpu.memory_space<vmem>>, vector<1x2x1xf32>
    %cst_13 = arith.constant dense<0xFF800000> : vector<2x1xf32>
    %12 = vector.multi_reduction <maximumf>, %10, %cst_13 [0] : vector<8x2x1xf32> to vector<2x1xf32>
    %13 = vector.shape_cast %12 : vector<2x1xf32> to vector<1x2x1xf32>
    %14 = arith.maximumf %11, %13 : vector<1x2x1xf32>
    %15 = arith.subf %11, %14 : vector<1x2x1xf32>
    %16 = math.exp %15 : vector<1x2x1xf32>
    %17 = vector.broadcast %14 : vector<1x2x1xf32> to vector<8x2x1xf32>
    %18 = arith.subf %10, %17 : vector<8x2x1xf32>
    %19 = math.exp %18 : vector<8x2x1xf32>
    %c0_14 = arith.constant 0 : index
    %c0_15 = arith.constant 0 : index
    %c0_16 = arith.constant 0 : index
    %20 = vector.load %arg7[%c0_14, %c0_15, %c0_16] : memref<1x2x1xf32, #tpu.memory_space<vmem>>, vector<1x2x1xf32>
    %21 = arith.mulf %16, %20 : vector<1x2x1xf32>
    %cst_17 = arith.constant dense<0.000000e+00> : vector<2x1xf32>
    %22 = vector.multi_reduction <add>, %19, %cst_17 [0] : vector<8x2x1xf32> to vector<2x1xf32>
    %23 = vector.shape_cast %22 : vector<2x1xf32> to vector<1x2x1xf32>
    %24 = arith.addf %21, %23 : vector<1x2x1xf32>
    %c0_18 = arith.constant 0 : index
    %c0_19 = arith.constant 0 : index
    %c0_20 = arith.constant 0 : index
    %25 = vector.load %arg7[%c0_18, %c0_19, %c0_20] : memref<1x2x1xf32, #tpu.memory_space<vmem>>, vector<1x2x1xf32>
    tpu.vector_store %arg7[%c0_18, %c0_19, %c0_20], %24 {strides = array<i32>} : memref<1x2x1xf32, #tpu.memory_space<vmem>>, vector<1x2x1xf32>,
    %26 = vector.broadcast %19 : vector<8x2x1xf32> to vector<8x2x32xf32>
    %27 = arith.mulf %26, %5 : vector<8x2x32xf32>
    %cst_21 = arith.constant dense<0.000000e+00> : vector<2x32xf32>
    %28 = vector.multi_reduction <add>, %27, %cst_21 [0] : vector<8x2x32xf32> to vector<2x32xf32>
    %29 = vector.shape_cast %28 : vector<2x32xf32> to vector<1x2x32xf32>
    %c0_22 = arith.constant 0 : index
    %c0_23 = arith.constant 0 : index
    %c0_24 = arith.constant 0 : index
    %30 = vector.load %arg8[%c0_22, %c0_23, %c0_24] : memref<1x2x128xf32, #tpu.memory_space<vmem>>, vector<1x2x32xf32>
    %31 = vector.broadcast %16 : vector<1x2x1xf32> to vector<1x2x32xf32>
    %32 = arith.mulf %31, %30 : vector<1x2x32xf32>
    %33 = arith.addf %32, %29 : vector<1x2x32xf32>
    %c0_25 = arith.constant 0 : index
    %c0_26 = arith.constant 0 : index
    %c0_27 = arith.constant 0 : index
    %34 = vector.load %arg8[%c0_25, %c0_26, %c0_27] : memref<1x2x128xf32, #tpu.memory_space<vmem>>, vector<1x2x32xf32>
    tpu.vector_store %arg8[%c0_25, %c0_26, %c0_27], %33 {strides = array<i32>} : memref<1x2x128xf32, #tpu.memory_space<vmem>>, vector<1x2x32xf32>,
    %c0_28 = arith.constant 0 : index
    %c0_29 = arith.constant 0 : index
    %c0_30 = arith.constant 0 : index
    %35 = vector.load %arg6[%c0_28, %c0_29, %c0_30] : memref<1x2x1xf32, #tpu.memory_space<vmem>>, vector<1x2x1xf32>
    tpu.vector_store %arg6[%c0_28, %c0_29, %c0_30], %14 {strides = array<i32>} : memref<1x2x1xf32, #tpu.memory_space<vmem>>, vector<1x2x1xf32>,
    %c0_i32_31 = arith.constant 0 : i32
    %36 = arith.cmpi eq, %arg1, %c0_i32_31 : i32
    %37 = arith.extui %36 : i1 to i32
    %c0_i32_32 = arith.constant 0 : i32
    %38 = arith.cmpi ne, %37, %c0_i32_32 : i32
    scf.if %38 {
      %c0_33 = arith.constant 0 : index
      %c0_34 = arith.constant 0 : index
      %c0_35 = arith.constant 0 : index
      %39 = vector.load %arg7[%c0_33, %c0_34, %c0_35] : memref<1x2x1xf32, #tpu.memory_space<vmem>>, vector<1x2x1xf32>
      %40 = tpu.reciprocal %39 {approx = true} : vector<1x2x1xf32> -> vector<1x2x1xf32>
      %c0_36 = arith.constant 0 : index
      %c0_37 = arith.constant 0 : index
      %c0_38 = arith.constant 0 : index
      %41 = vector.load %arg8[%c0_36, %c0_37, %c0_38] : memref<1x2x128xf32, #tpu.memory_space<vmem>>, vector<1x2x128xf32>
      %42 = vector.broadcast %40 : vector<1x2x1xf32> to vector<1x2x128xf32>
      %43 = arith.mulf %41, %42 : vector<1x2x128xf32>
      %44 = vector.shape_cast %43 : vector<1x2x128xf32> to vector<2x128xf32>
      %c0_39 = arith.constant 0 : index
      %c0_40 = arith.constant 0 : index
      %45 = vector.load %arg5[%c0_39, %c0_40] : memref<2x128xf32, #tpu.memory_space<vmem>>, vector<2x128xf32>
      tpu.vector_store %arg5[%c0_39, %c0_40], %44 {strides = array<i32>} : memref<2x128xf32, #tpu.memory_space<vmem>>, vector<2x128xf32>,
    } else {
    }
    return
  }
  func.func @transform_0(%arg0: i32, %arg1: i32) -> (i32, i32, i32) {
    %c0_i32 = arith.constant 0 : i32
    %c0_i32_0 = arith.constant 0 : i32
    return %arg1, %arg0, %c0_i32 : i32, i32, i32
  }
  func.func @transform_1(%arg0: i32, %arg1: i32) -> (i32, i32, i32) {
    %c0_i32 = arith.constant 0 : i32
    %c0_i32_0 = arith.constant 0 : i32
    return %arg1, %arg0, %c0_i32 : i32, i32, i32
  }
  func.func @transform_2(%arg0: i32, %arg1: i32) -> (i32, i32, i32) {
    %c0_i32 = arith.constant 0 : i32
    %c0_i32_0 = arith.constant 0 : i32
    return %arg1, %arg0, %c0_i32 : i32, i32, i32
  }
  func.func @transform_3(%arg0: i32, %arg1: i32) -> (i32, i32) {
    %c0_i32 = arith.constant 0 : i32
    %c0_i32_0 = arith.constant 0 : i32
    return %arg0, %c0_i32 : i32, i32
  }
}

</mosaic_0001>

<bundles_post_ra>
// kernel: tpu_custom_call.1
= control target key start
LH: loop header
LB: loop body
LE: loop exit
PB: predicated region body
PF: predicated region fallthrough
CT: control target
= control target key end

     0   :  { %8 = vsyncpa [#allocation6], 0  ;;  %s551_s0 = inlined_call_operand.hbm [shape: f32[8,2,32], index: 0, kind: input, shape index: {}]   ;;  %s552_s1 = inlined_call_operand.hbm [shape: f32[8,2,32], index: 1, kind: input, shape index: {}]   ;;  %s553_s2 = inlined_call_operand.hbm [shape: f32[8,2,32], index: 2, kind: input, shape index: {}]   ;;  %s554_s3 = inlined_call_operand.hbm [shape: f32[2,128], index: 3, kind: output, shape index: {}]  }
   0x1   :  { %9 = vsyncpa [#allocation9], 0 }
   0x2   :  { %10 = vsyncpa [#allocation7], 0  ;;  %s421_s12 = smov [#allocation8]   ;;  %s422_s14 = smov [#allocation5]  }
   0x3   :  { %s28_s13 = sshll.u32 %s421_s12, 4  ;;  %s16_s15 = sshll.u32 %s422_s14, 4  ;;  %s29_s13 = int_to_ptr.vmem [resolvable:$true] %s28_s13  ;;  %s450_s15 = int_to_ptr.vmem [resolvable:$true] %s16_s15 }
   0x4   :  { %s327_s18 = scalar_lea.hbm %s552_s1, 256 }
   0x5   :  { %p328_p0 = scmp.ne.s32.totalorder %s552_s1, %s327_s18  ;;  %p331_p1 = scmp.lt.u32.totalorder %s327_s18, %s552_s1 }
   0x7   :  { %p333_p2 = pnand %p331_p1, %p328_p0 }
   0x9   :  { %336 = shalt.err (!%p333_p2)
}
   0xa   :  { %s337_s23 = scalar_lea.vmem %s29_s13, 256  ;;  %p342_p4 = scmp.lt.s32.totalorder %s29_s13, %s29_s13 }
   0xb   :  { %p338_p3 = scmp.ne.s32.totalorder %s29_s13, %s337_s23  ;;  %p343_p5 = scmp.lt.s32.totalorder %s337_s23, %s337_s23 }
   0xd   :  { %p344_p6 = por %p343_p5, %p342_p4 }
   0xf   :  { %p345_p7 = pnand %p344_p6, %p338_p3 }
  0x11   :  { %348 = shalt.err (!%p345_p7)
}
  0x12   :  { %s423_s24 = smov 32   ;;  %s424_s25 = smov 2  }
  0x13   :  { %34 = dma.hbm_to_vmem [thread:$0]  %s552_s1, 256, %s29_s13, [#allocation9], %s423_s24, %s423_s24, %s424_s25  }
  0x14   :  { %s349_s30 = scalar_lea.hbm %s551_s0, 256 }
  0x15   :  { %p350_p8 = scmp.ne.s32.totalorder %s551_s0, %s349_s30  ;;  %p353_p9 = scmp.lt.u32.totalorder %s349_s30, %s551_s0 }
  0x17   :  { %p355_p10 = pnand %p353_p9, %p350_p8 }
  0x19   :  { %358 = shalt.err (!%p355_p10)
}
  0x1a   :  { %s359_s8 = scalar_lea.vmem %s450_s15, 256  ;;  %p364_p12 = scmp.lt.s32.totalorder %s450_s15, %s450_s15 }
  0x1b   :  { %p360_p11 = scmp.ne.s32.totalorder %s450_s15, %s359_s8  ;;  %p365_p13 = scmp.lt.s32.totalorder %s359_s8, %s359_s8 }
  0x1d   :  { %p366_p0 = por %p365_p13, %p364_p12 }
  0x1f   :  { %p367_p1 = pnand %p366_p0, %p360_p11 }
  0x21   :  { %370 = shalt.err (!%p367_p1)
}
  0x22   :  { %22 = dma.hbm_to_vmem [thread:$0]  %s551_s0, 256, %s450_s15, [#allocation6], %s423_s24, %s423_s24, %s424_s25  }
  0x23   :  { %s425_s10 = smov [#allocation10]   ;;  %s371_s14 = scalar_lea.hbm %s553_s2, 256 }
  0x24   :  { %s40_s11 = sshll.u32 %s425_s10, 4  ;;  %p372_p2 = scmp.ne.s32.totalorder %s553_s2, %s371_s14  ;;  %s41_s11 = int_to_ptr.vmem [resolvable:$true] %s40_s11 }
  0x25   :  { %p375_p3 = scmp.lt.u32.totalorder %s371_s14, %s553_s2 }
  0x27   :  { %p377_p4 = pnand %p375_p3, %p372_p2 }
  0x29   :  { %380 = shalt.err (!%p377_p4)
}
  0x2a   :  { %s381_s20 = scalar_lea.vmem %s41_s11, 256  ;;  %p386_p6 = scmp.lt.s32.totalorder %s41_s11, %s41_s11 }
  0x2b   :  { %p382_p5 = scmp.ne.s32.totalorder %s41_s11, %s381_s20  ;;  %p387_p7 = scmp.lt.s32.totalorder %s381_s20, %s381_s20 }
  0x2d   :  { %p388_p8 = por %p387_p7, %p386_p6 }
  0x2f   :  { %p389_p9 = pnand %p388_p8, %p382_p5 }
  0x31   :  { %392 = shalt.err (!%p389_p9)
}
  0x32   :  { %46 = dma.hbm_to_vmem [thread:$0]  %s553_s2, 256, %s41_s11, [#allocation9], %s423_s24, %s423_s24, %s424_s25  }
  0x33   :  { %415 = dma.done.wait [#allocation6], 256  }
  0x34   :  { %416 = vsyncadd [#allocation6], 4294967040 }
  0x35   :  { %417 = dma.done.wait [#allocation9], 512  }
  0x36   :  { %418 = vsyncadd [#allocation9], 4294966784  ;;  %vm96_vm0 = vcmask 254976   ;;  %v66_v0 = vld [vmem:[#allocation5 + $0x4] sm:$0x3]  ;;  %vm60_vm1 = vcmask 1024  }
  0x37   :  { %v74_v1 = vld [vmem:[#allocation8 + $0x4] sm:$0x3]  ;;  %v64_v2 = vld [vmem:[#allocation5] sm:$0x3]  ;;  %v72_v4 = vld [vmem:[#allocation8] sm:$0x3] }
  0x38   :  { %v90_v3 = vmul.f32 %v74_v1, %v66_v0  ;;  %v67_v5 = vld [vmem:[#allocation5 + $0x6] sm:$0x3]  ;;  %v75_v6 = vld [vmem:[#allocation8 + $0x6] sm:$0x3]  ;;  %v88_v7 = vmul.f32 %v72_v4, %v64_v2  ;;  %v65_v9 = vld [vmem:[#allocation5 + $0x2] sm:$0x3] }
  0x39   :  { %v91_v8 = vmul.f32 %v75_v6, %v67_v5  ;;  %v73_v10 = vld [vmem:[#allocation8 + $0x2] sm:$0x3]  ;;  %v69_v11 = vld [vmem:[#allocation5 + $0xa] sm:$0x3]  ;;  %v77_v14 = vld [vmem:[#allocation8 + $0xa] sm:$0x3] }
  0x3a   :  { %v103_v12 = vsel %vm96_vm0, %v90_v3, 0.0  ;;  %v89_v13 = vmul.f32 %v73_v10, %v65_v9  ;;  %v68_v15 = vld [vmem:[#allocation5 + $0x8] sm:$0x3]  ;;  %v97_v16 = vsel %vm96_vm0, %v88_v7, 0.0  ;;  %v76_v17 = vld [vmem:[#allocation8 + $0x8] sm:$0x3]  ;;  %v93_v19 = vmul.f32 %v77_v14, %v69_v11 }
  0x3b   :  { %104 = vadd.xlane.f32.xlu1 %v103_v12  ;;  %98 = vadd.xlane.f32.xlu0 %v97_v16  ;;  %v106_v18 = vsel %vm96_vm0, %v91_v8, 0.0  ;;  %v92_v21 = vmul.f32 %v76_v17, %v68_v15  ;;  %v71_v22 = vld [vmem:[#allocation5 + $0xe] sm:$0x3]  ;;  %v79_v23 = vld [vmem:[#allocation8 + $0xe] sm:$0x3]  ;;  %v426_v32 = vmov -inf  }
  0x3c   :  { %v100_v20 = vsel %vm96_vm0, %v89_v13, 0.0  ;;  %v70_v24 = vld [vmem:[#allocation5 + $0xc] sm:$0x3]  ;;  %v78_v25 = vld [vmem:[#allocation8 + $0xc] sm:$0x3]  ;;  %v112_v26 = vsel %vm96_vm0, %v93_v19, 0.0  ;;  %v95_v27 = vmul.f32 %v79_v23, %v71_v22 }
  0x3d   :  { %v109_v28 = vsel %vm96_vm0, %v92_v21, 0.0  ;;  %v94_v29 = vmul.f32 %v78_v25, %v70_v24  ;;  %61 = vst.msk [vmem:[#allocation2] sm:$0x3] %vm60_vm1, %v426_v32  ;;  %v427_v33 = vmov 0.0   ;;  %v428_v34 = vmov 0   ;;  %s429_s2 = smov [#allocation11]  }
  0x3e   :  { %v118_v30 = vsel %vm96_vm0, %v95_v27, 0.0  ;;  %62 = vst.msk [vmem:[#allocation3] sm:$0x3] %vm60_vm1, %v427_v33  ;;  %63 = vst [vmem:[#allocation4] sm:$0x3] %v427_v33  ;;  %306 = vset.pattern.permute.xlu1 %v428_v34  ;;  %305 = vset.pattern.permute.xlu0 %v428_v34  ;;  %vm130_vm2 = vcmask 1041408  }
  0x3f   :  { %107 = vadd.xlane.f32.xlu1 %v106_v18  ;;  %101 = vadd.xlane.f32.xlu0 %v100_v20  ;;  %v115_v31 = vsel %vm96_vm0, %v94_v29, 0.0  ;;  %s286_s21 = sshll.u32 %s429_s2, 4  ;;  %s287_s21 = int_to_ptr.vmem [resolvable:$true] %s286_s21 }
  0x40   :  { %s393_s22 = scalar_lea.vmem %s287_s21, 32  ;;  %p398_p11 = scmp.lt.s32.totalorder %s287_s21, %s287_s21 }
  0x41   :  { %p394_p10 = scmp.ne.s32.totalorder %s287_s21, %s393_s22  ;;  %p399_p12 = scmp.lt.s32.totalorder %s393_s22, %s393_s22 }
  0x43   :  { %113 = vadd.xlane.f32.xlu1 %v112_v26  ;;  %110 = vadd.xlane.f32.xlu0 %v109_v28  ;;  %p400_p13 = por %p399_p12, %p398_p11 }
  0x44   :  { %v129_v1 = vld [vmem:[#allocation2] sm:$0x3] }
  0x45   :  { %p401_p0 = pnand %p400_p13, %p394_p10 }
  0x47   :  { %119 = vadd.xlane.f32.xlu1 %v118_v30  ;;  %116 = vadd.xlane.f32.xlu0 %v115_v31 }
  0xc8   :  { %v105_v35 = vpop.xlane.xlu1 %104  ;;  %v99_v36 = vpop.xlane.xlu0 %98 }
  0xc9   :  { %v121_v42 = vmul.f32 0.17677669, %v99_v36  ;;  %v123_v46 = vmul.f32 0.17677669, %v105_v35 }
  0xcb   :  { %v131_v52 = vsel %vm130_vm2, %v121_v42, -inf  ;;  %v133_v59 = vsel %vm130_vm2, %v123_v46, -inf }
  0xcc   :  { %v108_v37 = vpop.xlane.xlu1 %107  ;;  %v102_v38 = vpop.xlane.xlu0 %101 }
  0xcd   :  { %v122_v43 = vmul.f32 0.17677669, %v102_v38  ;;  %v124_v45 = vmul.f32 0.17677669, %v108_v37 }
  0xcf   :  { %v132_v53 = vsel %vm130_vm2, %v122_v43, -inf  ;;  %v134_v55 = vsel %vm130_vm2, %v124_v45, -inf }
  0xd0   :  { %v114_v39 = vpop.xlane.xlu1 %113  ;;  %v111_v41 = vpop.xlane.xlu0 %110 }
  0xd1   :  { %v126_v40 = vmul.f32 0.17677669, %v114_v39  ;;  %v125_v44 = vmul.f32 0.17677669, %v111_v41 }
  0xd3   :  { %v137_v47 = vsel %vm130_vm2, %v126_v40, -inf  ;;  %v135_v48 = vsel %vm130_vm2, %v125_v44, -inf }
  0xd4   :  { %v120_v49 = vpop.xlane.xlu1 %119  ;;  %v117_v51 = vpop.xlane.xlu0 %116  ;;  %v138_v56 = vmax.f32 %v132_v53, %v137_v47  ;;  %v136_v57 = vmax.f32 %v131_v52, %v135_v48  ;;  %v81_v53 = vld [vmem:[#allocation10 + $0x2] sm:$0x3] }
  0xd5   :  { %v128_v50 = vmul.f32 0.17677669, %v120_v49  ;;  %v127_v54 = vmul.f32 0.17677669, %v117_v51 }
  0xd6   :  { %v143_v63 = vmax.f32 %v136_v57, %v138_v56  ;;  %v82_v56 = vld [vmem:[#allocation10 + $0x4] sm:$0x3] }
  0xd7   :  { %v141_v58 = vsel %vm130_vm2, %v128_v50, -inf  ;;  %v139_v61 = vsel %vm130_vm2, %v127_v54, -inf }
  0xd8   :  { %v142_v60 = vmax.f32 %v134_v55, %v141_v58  ;;  %v140_v62 = vmax.f32 %v133_v59, %v139_v61 }
  0xda   :  { %v144_v0 = vmax.f32 %v140_v62, %v142_v60  ;;  %v83_v60 = vld [vmem:[#allocation10 + $0x6] sm:$0x3]  ;;  %v84_v62 = vld [vmem:[#allocation10 + $0x8] sm:$0x3] }
  0xdc   :  { %v145_v2 = vmax.f32 %v143_v63, %v144_v0 }
  0xde   :  { %v146_v3 = vmax.f32 %v129_v1, %v145_v2 }
  0xe0   :  { %v150_v4 = vsub.f32 %v121_v42, %v146_v3  ;;  %v151_v5 = vsub.f32 %v122_v43, %v146_v3  ;;  %v152_v6 = vsub.f32 %v123_v46, %v146_v3  ;;  %266 = vst.msk [vmem:[#allocation2] sm:$0x3] %vm60_vm1, %v146_v3  ;;  %v153_v7 = vsub.f32 %v124_v45, %v146_v3  ;;  %v174_v42 = vld [vmem:[#allocation3] sm:$0x3] }
  0xe1   :  { %v154_v8 = vsub.f32 %v125_v44, %v146_v3  ;;  %v155_v12 = vsub.f32 %v126_v40, %v146_v3  ;;  %v156_v14 = vsub.f32 %v127_v54, %v146_v3  ;;  %v157_v16 = vsub.f32 %v128_v50, %v146_v3  ;;  %v80_v54 = vld [vmem:[#allocation10] sm:$0x3] }
  0xe2   :  { %v158_v9 = vmul.f32 1.442695, %v150_v4  ;;  %v160_v10 = vmul.f32 1.442695, %v151_v5  ;;  %v162_v11 = vmul.f32 1.442695, %v152_v6  ;;  %v147_v18 = vsub.f32 %v129_v1, %v146_v3 }
  0xe3   :  { %v164_v13 = vmul.f32 1.442695, %v153_v7  ;;  %v166_v15 = vmul.f32 1.442695, %v154_v8  ;;  %v168_v17 = vmul.f32 1.442695, %v155_v12 }
  0xe4   :  { %307 = vpow2.f32 %v158_v9  ;;  %v170_v19 = vmul.f32 1.442695, %v156_v14  ;;  %v172_v20 = vmul.f32 1.442695, %v157_v16  ;;  %v148_v21 = vmul.f32 1.442695, %v147_v18 }
  0xe5   :  { %309 = vpow2.f32 %v160_v10  ;;  %v85_v3 = vld [vmem:[#allocation10 + $0xa] sm:$0x3]  ;;  %v87_v18 = vld [vmem:[#allocation10 + $0xe] sm:$0x3] }
  0xe6   :  { %311 = vpow2.f32 %v162_v11  ;;  %v86_v11 = vld [vmem:[#allocation10 + $0xc] sm:$0x3] }
  0xe7   :  { %313 = vpow2.f32 %v164_v13 }
  0xe8   :  { %315 = vpow2.f32 %v166_v15 }
  0xe9   :  { %317 = vpow2.f32 %v168_v17 }
  0xea   :  { %319 = vpow2.f32 %v170_v19 }
  0xeb   :  { %321 = vpow2.f32 %v172_v20 }
  0xec   :  { %323 = vpow2.f32 %v148_v21 }
  0xee   :  { %v308_v22 = vpop.eup %307 }
  0xef   :  { %v310_v23 = vpop.eup %309  ;;  %v177_v24 = vsel %vm60_vm1, %v308_v22, 0.0  ;;  %196 = vperm.xlu0 %305, %v308_v22  }
  0xf0   :  { %v312_v25 = vpop.eup %311  ;;  %v178_v26 = vsel %vm60_vm1, %v310_v23, 0.0  ;;  %201 = vperm.xlu1 %306, %v310_v23  }
  0xf1   :  { %v314_v27 = vpop.eup %313  ;;  %v179_v28 = vadd.f32 %v178_v26, %v177_v24  ;;  %v180_v29 = vsel %vm60_vm1, %v312_v25, 0.0  ;;  %v257_v24 = vld [vmem:[#allocation4] sm:$0x3] }
  0xf2   :  { %v316_v30 = vpop.eup %315  ;;  %v182_v32 = vsel %vm60_vm1, %v314_v27, 0.0 }
  0xf3   :  { %v181_v31 = vadd.f32 %v180_v29, %v179_v28  ;;  %v318_v33 = vpop.eup %317  ;;  %v184_v35 = vsel %vm60_vm1, %v316_v30, 0.0 }
  0xf4   :  { %206 = vperm.xlu1 %306, %v312_v25   ;;  %v320_v36 = vpop.eup %319  ;;  %v186_v38 = vsel %vm60_vm1, %v318_v33, 0.0 }
  0xf5   :  { %v183_v34 = vadd.f32 %v182_v32, %v181_v31  ;;  %v322_v39 = vpop.eup %321  ;;  %v188_v43 = vsel %vm60_vm1, %v320_v36, 0.0 }
  0xf6   :  { %v324_v41 = vpop.eup %323  ;;  %v190_v45 = vsel %vm60_vm1, %v322_v39, 0.0 }
  0xf7   :  { %v185_v37 = vadd.f32 %v184_v35, %v183_v34  ;;  %v175_v46 = vmul.f32 %v324_v41, %v174_v42 }
  0xf8   :  { %211 = vperm.xlu1 %306, %v314_v27  }
  0xf9   :  { %v187_v40 = vadd.f32 %v186_v38, %v185_v37 }
  0xfb   :  { %v189_v44 = vadd.f32 %v188_v43, %v187_v40 }
  0xfc   :  { %216 = vperm.xlu1 %306, %v316_v30  }
  0xfd   :  { %v191_v47 = vadd.f32 %v190_v45, %v189_v44 }
  0xff   :  { %v192_v48 = vadd.f32 %v191_v47, %v175_v46 }
 0x100   :  { %221 = vperm.xlu1 %306, %v318_v33  }
 0x101   :  { %193 = vst.msk [vmem:[#allocation3] sm:$0x3] %vm60_vm1, %v192_v48 }
 0x104   :  { %226 = vperm.xlu1 %306, %v320_v36  }
 0x108   :  { %231 = vperm.xlu1 %306, %v322_v39   ;;  %v270_v49 = vld [vmem:[#allocation3] sm:$0x3] }
 0x109   :  { %325 = vrcp.f32 %v270_v49 }
 0x10c   :  { %260 = vperm.xlu1 %306, %v324_v41  }
 0x113   :  { %v326_v50 = vpop.eup %325 }
 0x114   :  { %275 = vperm.xlu0 %305, %v326_v50  }
 0x16e   :  { %v197_v55 = vpop.permute.xlu0 %196 }
 0x16f   :  { %v202_v51 = vpop.permute.xlu1 %201  ;;  %v234_v59 = vmul.f32 %v197_v55, %v80_v54 }
 0x170   :  { %v235_v58 = vmul.f32 %v202_v51, %v81_v53 }
 0x171   :  { %v242_v1 = vsel %vm96_vm0, %v234_v59, 0.0 }
 0x172   :  { %v243_v0 = vsel %vm96_vm0, %v235_v58, 0.0 }
 0x173   :  { %v207_v52 = vpop.permute.xlu1 %206  ;;  %v244_v6 = vadd.f32 %v243_v0, %v242_v1 }
 0x174   :  { %v236_v61 = vmul.f32 %v207_v52, %v82_v56 }
 0x176   :  { %v245_v4 = vsel %vm96_vm0, %v236_v61, 0.0 }
 0x177   :  { %v212_v57 = vpop.permute.xlu1 %211  ;;  %v246_v10 = vadd.f32 %v245_v4, %v244_v6 }
 0x178   :  { %v237_v2 = vmul.f32 %v212_v57, %v83_v60 }
 0x17a   :  { %v247_v8 = vsel %vm96_vm0, %v237_v2, 0.0 }
 0x17b   :  { %v217_v63 = vpop.permute.xlu1 %216  ;;  %v248_v13 = vadd.f32 %v247_v8, %v246_v10 }
 0x17c   :  { %v238_v5 = vmul.f32 %v217_v63, %v84_v62 }
 0x17e   :  { %v249_v12 = vsel %vm96_vm0, %v238_v5, 0.0 }
 0x17f   :  { %v222_v7 = vpop.permute.xlu1 %221  ;;  %v250_v17 = vadd.f32 %v249_v12, %v248_v13 }
 0x180   :  { %v239_v9 = vmul.f32 %v222_v7, %v85_v3 }
 0x182   :  { %v251_v15 = vsel %vm96_vm0, %v239_v9, 0.0 }
 0x183   :  { %v227_v14 = vpop.permute.xlu1 %226  ;;  %v252_v20 = vadd.f32 %v251_v15, %v250_v17 }
 0x184   :  { %v240_v16 = vmul.f32 %v227_v14, %v86_v11 }
 0x186   :  { %v253_v19 = vsel %vm96_vm0, %v240_v16, 0.0 }
 0x187   :  { %v232_v21 = vpop.permute.xlu1 %231  ;;  %v254_v23 = vadd.f32 %v253_v19, %v252_v20 }
 0x188   :  { %v241_v22 = vmul.f32 %v232_v21, %v87_v18 }
 0x18a   :  { %v255_v25 = vsel %vm96_vm0, %v241_v22, 0.0 }
 0x18b   :  { %v256_v26 = vadd.f32 %v255_v25, %v254_v23  ;;  %v261_v27 = vpop.permute.xlu1 %260 }
 0x18c   :  { %v263_v28 = vmul.f32 %v261_v27, %v257_v24 }
 0x18e   :  { %v264_v29 = vadd.f32 %v263_v28, %v256_v26 }
 0x190   :  { %265 = vst.msk [vmem:[#allocation4] sm:$0x3] %vm96_vm0, %v264_v29 }
 0x193   :  { %v276_v31 = vpop.permute.xlu0 %275 }
 0x197   :  { %v272_v30 = vld [vmem:[#allocation4] sm:$0x3] }
 0x198   :  { %v278_v32 = vmul.f32 %v276_v31, %v272_v30 }
 0x19a   :  { %279 = vst [vmem:[#allocation11] sm:$0x3] %v278_v32 }
 0x19b   :  { %404 = shalt.err (!%p401_p0)
}
 0x19c   :  { %s405_s25 = scalar_lea.hbm %s554_s3, 32 }
 0x19d   :  { %p406_p1 = scmp.ne.s32.totalorder %s554_s3, %s405_s25  ;;  %p409_p2 = scmp.lt.u32.totalorder %s405_s25, %s554_s3 }
 0x19f   :  { %p411_p3 = pnand %p409_p2, %p406_p1 }
 0x1a1   :  { %414 = shalt.err (!%p411_p3)
}
 0x1a2   :  { %289 = dma.vmem_to_hbm [thread:$0]  %s287_s21, 32, %s554_s3, [#allocation7]  }
 0x1a3   :  { %419 = dma.done.wait [#allocation7], 32  }
 0x1a4   :  { %420 = vsyncadd [#allocation7], 4294967264 }
 0x1a5   :  { %293 = vsyncpa [#allocation6], 1 }
 0x1a6   :  { %294 = vsyncpa [#allocation9], 1 }
 0x1a7   :  { %295 = vsyncpa [#allocation7], 1 }

</bundles_post_ra>
